<compile_context>
chip_gen: v7x
topology: tpu7x:2x2x1
jax: 0.10.0
libtpu: 0.0.40
codegen_flags: <defaults>
</compile_context>

<pallas_src>
import functools

import jax
import jax.numpy as jnp
from jax.experimental import pallas as pl
from jax.experimental.pallas import tpu as pltpu

GAMMA = 2.0


def _pow(base, gamma):
    # Deterministic, Mosaic-friendly power: integer gammas via repeated multiply.
    g = float(gamma)
    if g.is_integer() and g >= 0:
        k = int(g)
        if k == 0:
            return jnp.ones_like(base)
        out = base
        for _ in range(k - 1):
            out = out * base
        return out
    return jnp.power(base, g)


def _round_up(x, m):
    return ((x + m - 1) // m) * m


def _vmem_capacity_bytes():
    try:
        return int(pltpu.get_tpu_info().vmem_capacity_bytes)
    except Exception:
        return 128 * 1024 * 1024  # v5e/v6e default if the query is unavailable


def _choose_tiles(n, c, itemsize, tile_budget):
    """Pick (tile_n, tile_c) for an (N, C) focal-loss problem.

    Bytes-based: the largest row tile whose double-buffered logits block plus
    ~6 f32-sized full-tile temporaries fits `tile_budget`. The class axis is
    split (online LSE) only when even the minimum row tile does not fit.
    """
    sub = {4: 8, 2: 16, 1: 32}.get(itemsize, 8)   # sublane packing of the dtype
    per_elem = 2 * itemsize + 6 * 4               # 2x input buffers + f32/i32 temps
    min_rows = min(n, sub)

    if c * per_elem * min_rows <= tile_budget:
        # Full class extent fits in one block: row tiling only.
        tile_c = c
        if n <= sub:
            return n, tile_c
        max_rows = max(sub, (tile_budget // (c * per_elem)) // sub * sub)
        tile_n = min(_round_up(n, sub), max_rows)
        if n >= 2 * sub and tile_n >= n:
            # keep >=2 row tiles so the "parallel" axis feeds both v7x cores
            tile_n = _round_up(-(-n // 2), sub)
        return max(sub, tile_n), tile_c

    # Vocab-scale C: class-split path (running max / sum-exp carried in scratch).
    tile_n = n if n <= sub else max(sub, min((n // sub) * sub, 128))
    cols = tile_budget // max(tile_n * per_elem, 1)
    tile_c = max(128, (cols // 128) * 128)        # class chunks must be lane-aligned
    tile_c = min(tile_c, c)
    return tile_n, tile_c


def focal_loss_kernel(logits_ref, target_ref, out_ref, m_sc, l_sc, picked_sc,
                      *, gamma, n_total, c_total, mask_classes):
    i = pl.program_id(0)          # row-tile index ("parallel")
    k = pl.program_id(1)          # class-chunk index ("arbitrary", reduction)
    nk = pl.num_programs(1)

    x = logits_ref[...]           # (TILE_N, TILE_C), native dtype
    t = target_ref[...]           # (TILE_N, 1) int32
    tn, tc = x.shape

    @pl.when(k == 0)
    def _():
        m_sc[...] = jnp.full_like(m_sc, -jnp.inf)
        l_sc[...] = jnp.zeros_like(l_sc)
        picked_sc[...] = jnp.zeros_like(picked_sc)

    # Global class ids for this chunk as a (1, TILE_C) lane iota; broadcasting
    # against the (TILE_N, 1) targets avoids materializing a (TILE_N, TILE_C) iota.
    cls = k * tc + jax.lax.broadcasted_iota(jnp.int32, (1, tc), 1)
    onehot = cls == t                                       # (TILE_N, TILE_C)

    m_prev = m_sc[...]
    if mask_classes:
        # ragged last class chunk: ignore padded class columns
        xf = jnp.where(cls < c_total, x.astype(jnp.float32), -jnp.inf)
        chunk_max = jnp.max(xf, axis=-1, keepdims=True)
        m_new = jnp.maximum(m_prev, chunk_max)
        sum_e = jnp.sum(jnp.exp(xf - m_new), axis=-1, keepdims=True)
        picked = jnp.sum(jnp.where(onehot, xf, 0.0), axis=-1, keepdims=True)
    else:
        # max on the native dtype; f32 cast folded into the exp argument so no
        # full-tile f32 copy of the logits is bound (v5e store-slot / v7x VMEM relief)
        chunk_max = jnp.max(x, axis=-1, keepdims=True).astype(jnp.float32)
        m_new = jnp.maximum(m_prev, chunk_max)
        sum_e = jnp.sum(jnp.exp(x.astype(jnp.float32) - m_new),
                        axis=-1, keepdims=True)
        picked = jnp.sum(jnp.where(onehot, x.astype(jnp.float32), 0.0),
                         axis=-1, keepdims=True)

    # online-LSE update (exact single-pass result when nk == 1)
    l_sc[...] = l_sc[...] * jnp.exp(m_prev - m_new) + sum_e
    m_sc[...] = m_new
    picked_sc[...] = picked_sc[...] + picked

    @pl.when(k == nk - 1)
    def _():
        lse = m_sc[...] + jnp.log(l_sc[...])
        lp = picked_sc[...] - lse                  # log p_t  (target class only)
        p_t = jnp.exp(lp)
        focal_row = _pow(1.0 - p_t, gamma) * lp    # per-row focal term
        # mask padded rows of a partial last row tile (select discards NaN/Inf)
        row_ids = i * tn + jax.lax.broadcasted_iota(jnp.int32, (tn, 1), 0)
        valid = row_ids < n_total
        tile_sum = jnp.sum(jnp.where(valid, focal_row, 0.0))
        # lane-dense (1, 1, 128) partial-sum block; wrapper reads [:, 0, 0]
        out_ref[...] = jnp.full((1, 1, 128), tile_sum, dtype=jnp.float32)


def focal_loss(logits, target, gamma=GAMMA, tile_n=None, tile_c=None):
    """logits: (N, C), target: (N,) int -> scalar float32 (mean focal loss)."""
    # TODO(synk): PyTorch nll_loss's ignore_index (default -100) is not handled;
    # all targets are assumed to be valid class indices (module-default usage).
    n, c = logits.shape
    target2d = target.astype(jnp.int32).reshape(n, 1)

    itemsize = jnp.dtype(logits.dtype).itemsize
    vmem_cap = _vmem_capacity_bytes()
    # generation-aware budgets: ~25% of physical VMEM for the double-buffered logits
    # tiles (16 MiB on v7x, 32 MiB on v5e/v6e); scoped limit 48 MiB (v7x) / 96 MiB.
    tile_budget = vmem_cap // 4
    vmem_limit = min(96 * 1024 * 1024, (vmem_cap * 3) // 4)

    auto_n, auto_c = _choose_tiles(n, c, itemsize, tile_budget)
    tile_n = auto_n if tile_n is None else tile_n
    tile_c = auto_c if tile_c is None else tile_c

    num_row_tiles = -(-n // tile_n)
    num_c_tiles = -(-c // tile_c)
    mask_classes = (c % tile_c) != 0

    partials = pl.pallas_call(
        functools.partial(focal_loss_kernel, gamma=gamma, n_total=n,
                          c_total=c, mask_classes=mask_classes),
        out_shape=jax.ShapeDtypeStruct((num_row_tiles, 1, 128), jnp.float32),
        grid=(num_row_tiles, num_c_tiles),
        in_specs=[
            pl.BlockSpec((tile_n, tile_c), lambda i, k: (i, k)),
            pl.BlockSpec((tile_n, 1), lambda i, k: (i, 0)),
        ],
        out_specs=pl.BlockSpec((1, 1, 128), lambda i, k: (i, 0, 0)),
        scratch_shapes=[
            pltpu.VMEM((tile_n, 1), jnp.float32),   # running row max
            pltpu.VMEM((tile_n, 1), jnp.float32),   # running sum-exp
            pltpu.VMEM((tile_n, 1), jnp.float32),   # gathered target logit
        ],
        compiler_params=pltpu.CompilerParams(
            dimension_semantics=("parallel", "arbitrary"),
            vmem_limit_bytes=vmem_limit,
        ),
    )(logits, target2d)

    # reduction='mean' over the full batch (divide by total N, not per-tile rows)
    return -jnp.sum(partials[:, 0, 0]) / jnp.float32(n)


def focal_loss_ref(logits, target, gamma=GAMMA):
    # pure-JAX reference (mirrors the PyTorch forward)
    log_prob = jax.nn.log_softmax(logits.astype(jnp.float32), axis=-1)
    prob = jnp.exp(log_prob)
    focal = (1.0 - prob) ** gamma * log_prob
    picked = jnp.take_along_axis(focal, target[:, None].astype(jnp.int32), axis=-1)[:, 0]
    return -jnp.mean(picked)


if __name__ == "__main__":
    key = jax.random.PRNGKey(0)
    k1, k2 = jax.random.split(key)

    # case 1: small shape matching the module (N rows, C classes), single tile
    N, C = 8, 32
    logits = jax.random.normal(k1, (N, C), dtype=jnp.float32)
    target = jax.random.randint(k2, (N,), 0, C, dtype=jnp.int32)
    loss = focal_loss(logits, target)
    jax.block_until_ready(loss)
    ref = focal_loss_ref(logits, target)
    assert jnp.allclose(loss, ref, atol=1e-5, rtol=1e-4), (loss, ref)

    # case 2: N not a multiple of the row tile -> multi-tile parallel grid plus
    # padded-row masking on the partial last tile
    k3, k4 = jax.random.split(k2)
    N2, C2 = 300, 256
    logits2 = jax.random.normal(k3, (N2, C2), dtype=jnp.float32)
    target2 = jax.random.randint(k4, (N2,), 0, C2, dtype=jnp.int32)
    loss2 = focal_loss(logits2, target2)
    jax.block_until_ready(loss2)
    ref2 = focal_loss_ref(logits2, target2)
    assert jnp.allclose(loss2, ref2, atol=1e-5, rtol=1e-4), (loss2, ref2)

    # case 3: bf16 logits -> exercises dtype-aware (16-row) sublane rounding
    k5, k6 = jax.random.split(k4)
    N3, C3 = 64, 128
    logits3 = jax.random.normal(k5, (N3, C3), dtype=jnp.float32).astype(jnp.bfloat16)
    target3 = jax.random.randint(k6, (N3,), 0, C3, dtype=jnp.int32)
    loss3 = focal_loss(logits3, target3)
    jax.block_until_ready(loss3)
    ref3 = focal_loss_ref(logits3, target3)
    assert jnp.allclose(loss3, ref3, atol=1e-4, rtol=1e-3), (loss3, ref3)

    # case 4: forced class-split (online-LSE path) with a ragged last class chunk
    k7, k8 = jax.random.split(k6)
    N4, C4 = 24, 200
    logits4 = jax.random.normal(k7, (N4, C4), dtype=jnp.float32)
    target4 = jax.random.randint(k8, (N4,), 0, C4, dtype=jnp.int32)
    loss4 = focal_loss(logits4, target4, tile_n=8, tile_c=128)
    jax.block_until_ready(loss4)
    ref4 = focal_loss_ref(logits4, target4)
    assert jnp.allclose(loss4, ref4, atol=1e-5, rtol=1e-4), (loss4, ref4)

    print("KERNEL_OK")
</pallas_src>

<mosaic_0001>
module attributes {stable_mosaic.version = 11 : i64} {
  func.func @focal_loss_kernel(%arg0: i32, %arg1: i32, %arg2: memref<8x32xf32, #tpu.memory_space<vmem>>, %arg3: memref<8x1xi32, #tpu.memory_space<vmem>>, %arg4: memref<1x1x128xf32, #tpu.memory_space<vmem>>, %arg5: memref<8x1xf32, #tpu.memory_space<vmem>>, %arg6: memref<8x1xf32, #tpu.memory_space<vmem>>, %arg7: memref<8x1xf32, #tpu.memory_space<vmem>>) attributes {dimension_semantics = [#tpu.dimension_semantics<parallel>, #tpu.dimension_semantics<arbitrary>], iteration_bounds = array<i64: 1, 1>, scalar_prefetch = 0 : i64, scratch_operands = 3 : i64, tpu.core_type = #tpu.core_type<tc>, window_params = [{transform_indices = @transform_0, window_bounds = array<i64: 8, 32>}, {transform_indices = @transform_1, window_bounds = array<i64: 8, 1>}, {transform_indices = @transform_2, window_bounds = array<i64: 1, 1, 128>}]} {
    %c0 = arith.constant 0 : index
    %c0_0 = arith.constant 0 : index
    %0 = vector.load %arg2[%c0, %c0_0] : memref<8x32xf32, #tpu.memory_space<vmem>>, vector<8x32xf32>
    %c0_1 = arith.constant 0 : index
    %c0_2 = arith.constant 0 : index
    %1 = vector.load %arg3[%c0_1, %c0_2] : memref<8x1xi32, #tpu.memory_space<vmem>>, vector<8x1xi32>
    %c0_i32 = arith.constant 0 : i32
    %2 = arith.cmpi eq, %arg1, %c0_i32 : i32
    %3 = arith.extui %2 : i1 to i32
    %c0_i32_3 = arith.constant 0 : i32
    %4 = arith.cmpi ne, %3, %c0_i32_3 : i32
    scf.if %4 {
      %cst_21 = arith.constant 0xFF800000 : f32
      %38 = vector.broadcast %cst_21 : f32 to vector<8x1xf32>
      %c0_22 = arith.constant 0 : index
      %c0_23 = arith.constant 0 : index
      %39 = vector.load %arg5[%c0_22, %c0_23] : memref<8x1xf32, #tpu.memory_space<vmem>>, vector<8x1xf32>
      tpu.vector_store %arg5[%c0_22, %c0_23], %38 {strides = array<i32>} : memref<8x1xf32, #tpu.memory_space<vmem>>, vector<8x1xf32>,
      %cst_24 = arith.constant 0.000000e+00 : f32
      %40 = vector.broadcast %cst_24 : f32 to vector<8x1xf32>
      %c0_25 = arith.constant 0 : index
      %c0_26 = arith.constant 0 : index
      %41 = vector.load %arg6[%c0_25, %c0_26] : memref<8x1xf32, #tpu.memory_space<vmem>>, vector<8x1xf32>
      tpu.vector_store %arg6[%c0_25, %c0_26], %40 {strides = array<i32>} : memref<8x1xf32, #tpu.memory_space<vmem>>, vector<8x1xf32>,
      %cst_27 = arith.constant 0.000000e+00 : f32
      %42 = vector.broadcast %cst_27 : f32 to vector<8x1xf32>
      %c0_28 = arith.constant 0 : index
      %c0_29 = arith.constant 0 : index
      %43 = vector.load %arg7[%c0_28, %c0_29] : memref<8x1xf32, #tpu.memory_space<vmem>>, vector<8x1xf32>
      tpu.vector_store %arg7[%c0_28, %c0_29], %42 {strides = array<i32>} : memref<8x1xf32, #tpu.memory_space<vmem>>, vector<8x1xf32>,
    } else {
    }
    %c32_i32 = arith.constant 32 : i32
    %5 = arith.muli %arg1, %c32_i32 : i32
    %6 = tpu.iota {dimensions = array<i32: 1>} : vector<1x32xi32>
    %7 = vector.broadcast %5 : i32 to vector<1x32xi32>
    %8 = arith.addi %7, %6 : vector<1x32xi32>
    %9 = vector.broadcast %8 : vector<1x32xi32> to vector<8x32xi32>
    %10 = vector.broadcast %1 : vector<8x1xi32> to vector<8x32xi32>
    %11 = arith.cmpi eq, %9, %10 : vector<8x32xi32>
    %c0_4 = arith.constant 0 : index
    %c0_5 = arith.constant 0 : index
    %12 = vector.load %arg5[%c0_4, %c0_5] : memref<8x1xf32, #tpu.memory_space<vmem>>, vector<8x1xf32>
    %cst = arith.constant dense<0xFF800000> : vector<8xf32>
    %13 = vector.multi_reduction <maximumf>, %0, %cst [1] : vector<8x32xf32> to vector<8xf32>
    %14 = vector.shape_cast %13 : vector<8xf32> to vector<8x1xf32>
    %15 = arith.maximumf %12, %14 : vector<8x1xf32>
    %16 = vector.broadcast %15 : vector<8x1xf32> to vector<8x32xf32>
    %17 = arith.subf %0, %16 : vector<8x32xf32>
    %18 = math.exp %17 : vector<8x32xf32>
    %cst_6 = arith.constant dense<0.000000e+00> : vector<8xf32>
    %19 = vector.multi_reduction <add>, %18, %cst_6 [1] : vector<8x32xf32> to vector<8xf32>
    %20 = vector.shape_cast %19 : vector<8xf32> to vector<8x1xf32>
    %cst_7 = arith.constant 0.000000e+00 : f32
    %21 = vector.broadcast %cst_7 : f32 to vector<8x32xf32>
    %22 = arith.select %11, %0, %21 : vector<8x32xi1>, vector<8x32xf32>
    %cst_8 = arith.constant dense<0.000000e+00> : vector<8xf32>
    %23 = vector.multi_reduction <add>, %22, %cst_8 [1] : vector<8x32xf32> to vector<8xf32>
    %24 = vector.shape_cast %23 : vector<8xf32> to vector<8x1xf32>
    %c0_9 = arith.constant 0 : index
    %c0_10 = arith.constant 0 : index
    %25 = vector.load %arg6[%c0_9, %c0_10] : memref<8x1xf32, #tpu.memory_space<vmem>>, vector<8x1xf32>
    %26 = arith.subf %12, %15 : vector<8x1xf32>
    %27 = math.exp %26 : vector<8x1xf32>
    %28 = arith.mulf %25, %27 : vector<8x1xf32>
    %29 = arith.addf %28, %20 : vector<8x1xf32>
    %c0_11 = arith.constant 0 : index
    %c0_12 = arith.constant 0 : index
    %30 = vector.load %arg6[%c0_11, %c0_12] : memref<8x1xf32, #tpu.memory_space<vmem>>, vector<8x1xf32>
    tpu.vector_store %arg6[%c0_11, %c0_12], %29 {strides = array<i32>} : memref<8x1xf32, #tpu.memory_space<vmem>>, vector<8x1xf32>,
    %c0_13 = arith.constant 0 : index
    %c0_14 = arith.constant 0 : index
    %31 = vector.load %arg5[%c0_13, %c0_14] : memref<8x1xf32, #tpu.memory_space<vmem>>, vector<8x1xf32>
    tpu.vector_store %arg5[%c0_13, %c0_14], %15 {strides = array<i32>} : memref<8x1xf32, #tpu.memory_space<vmem>>, vector<8x1xf32>,
    %c0_15 = arith.constant 0 : index
    %c0_16 = arith.constant 0 : index
    %32 = vector.load %arg7[%c0_15, %c0_16] : memref<8x1xf32, #tpu.memory_space<vmem>>, vector<8x1xf32>
    %33 = arith.addf %32, %24 : vector<8x1xf32>
    %c0_17 = arith.constant 0 : index
    %c0_18 = arith.constant 0 : index
    %34 = vector.load %arg7[%c0_17, %c0_18] : memref<8x1xf32, #tpu.memory_space<vmem>>, vector<8x1xf32>
    tpu.vector_store %arg7[%c0_17, %c0_18], %33 {strides = array<i32>} : memref<8x1xf32, #tpu.memory_space<vmem>>, vector<8x1xf32>,
    %c0_i32_19 = arith.constant 0 : i32
    %35 = arith.cmpi eq, %arg1, %c0_i32_19 : i32
    %36 = arith.extui %35 : i1 to i32
    %c0_i32_20 = arith.constant 0 : i32
    %37 = arith.cmpi ne, %36, %c0_i32_20 : i32
    scf.if %37 {
      %c0_21 = arith.constant 0 : index
      %c0_22 = arith.constant 0 : index
      %38 = vector.load %arg5[%c0_21, %c0_22] : memref<8x1xf32, #tpu.memory_space<vmem>>, vector<8x1xf32>
      %c0_23 = arith.constant 0 : index
      %c0_24 = arith.constant 0 : index
      %39 = vector.load %arg6[%c0_23, %c0_24] : memref<8x1xf32, #tpu.memory_space<vmem>>, vector<8x1xf32>
      %40 = math.log %39 : vector<8x1xf32>
      %41 = arith.addf %38, %40 : vector<8x1xf32>
      %c0_25 = arith.constant 0 : index
      %c0_26 = arith.constant 0 : index
      %42 = vector.load %arg7[%c0_25, %c0_26] : memref<8x1xf32, #tpu.memory_space<vmem>>, vector<8x1xf32>
      %43 = arith.subf %42, %41 : vector<8x1xf32>
      %44 = math.exp %43 : vector<8x1xf32>
      %cst_27 = arith.constant 1.000000e+00 : f32
      %45 = vector.broadcast %cst_27 : f32 to vector<8x1xf32>
      %46 = arith.subf %45, %44 : vector<8x1xf32>
      %47 = arith.mulf %46, %46 : vector<8x1xf32>
      %48 = arith.mulf %47, %43 : vector<8x1xf32>
      %c8_i32 = arith.constant 8 : i32
      %49 = arith.muli %arg0, %c8_i32 : i32
      %50 = tpu.iota {dimensions = array<i32: 0>} : vector<8x1xi32>
      %51 = vector.broadcast %49 : i32 to vector<8x1xi32>
      %52 = arith.addi %51, %50 : vector<8x1xi32>
      %c8_i32_28 = arith.constant 8 : i32
      %53 = vector.broadcast %c8_i32_28 : i32 to vector<8x1xi32>
      %54 = arith.cmpi slt, %52, %53 : vector<8x1xi32>
      %cst_29 = arith.constant 0.000000e+00 : f32
      %55 = vector.broadcast %cst_29 : f32 to vector<8x1xf32>
      %56 = arith.select %54, %48, %55 : vector<8x1xi1>, vector<8x1xf32>
      %57 = vector.shape_cast %56 : vector<8x1xf32> to vector<1x8x1xf32>
      %cst_30 = arith.constant dense<0.000000e+00> : vector<1xf32>
      %58 = vector.multi_reduction <add>, %57, %cst_30 [1, 2] : vector<1x8x1xf32> to vector<1xf32>
      %59 = vector.shape_cast %58 : vector<1xf32> to vector<1x1x1xf32>
      %60 = vector.extract %59[0, 0, 0] : f32 from vector<1x1x1xf32>
      %61 = vector.broadcast %60 : f32 to vector<1x1x128xf32>
      %c0_31 = arith.constant 0 : index
      %c0_32 = arith.constant 0 : index
      %c0_33 = arith.constant 0 : index
      %62 = vector.load %arg4[%c0_31, %c0_32, %c0_33] : memref<1x1x128xf32, #tpu.memory_space<vmem>>, vector<1x1x128xf32>
      tpu.vector_store %arg4[%c0_31, %c0_32, %c0_33], %61 {strides = array<i32>} : memref<1x1x128xf32, #tpu.memory_space<vmem>>, vector<1x1x128xf32>,
    } else {
    }
    return
  }
  func.func @transform_0(%arg0: i32, %arg1: i32) -> (i32, i32) {
    %c0_i32 = arith.constant 0 : i32
    return %arg0, %arg1 : i32, i32
  }
  func.func @transform_1(%arg0: i32, %arg1: i32) -> (i32, i32) {
    %c0_i32 = arith.constant 0 : i32
    %c0_i32_0 = arith.constant 0 : i32
    return %arg0, %c0_i32 : i32, i32
  }
  func.func @transform_2(%arg0: i32, %arg1: i32) -> (i32, i32, i32) {
    %c0_i32 = arith.constant 0 : i32
    %c0_i32_0 = arith.constant 0 : i32
    %c0_i32_1 = arith.constant 0 : i32
    return %arg0, %c0_i32, %c0_i32_0 : i32, i32, i32
  }
}

</mosaic_0001>

<bundles_post_ra>
// kernel: tpu_custom_call.1
= control target key start
LH: loop header
LB: loop body
LE: loop exit
PB: predicated region body
PF: predicated region fallthrough
CT: control target
= control target key end

     0   :  { %7 = vsyncpa [#allocation6], 0  ;;  %s295_s0 = inlined_call_operand.hbm [shape: f32[8,32], index: 0, kind: input, shape index: {}]   ;;  %s296_s1 = inlined_call_operand.hbm [shape: s32[8,1], index: 1, kind: input, shape index: {}]   ;;  %s297_s2 = inlined_call_operand.hbm [shape: f32[1,1,128], index: 2, kind: output, shape index: {}]  }
   0x1   :  { %8 = vsyncpa [#allocation9], 0 }
   0x2   :  { %9 = vsyncpa [#allocation7], 0  ;;  %s228_s9 = smov [#allocation5]   ;;  %s229_s11 = smov [#allocation8]  }
   0x3   :  { %s16_s10 = sshll.u32 %s228_s9, 4  ;;  %s26_s12 = sshll.u32 %s229_s11, 4  ;;  %s17_s10 = int_to_ptr.vmem [resolvable:$true] %s16_s10  ;;  %s27_s12 = int_to_ptr.vmem [resolvable:$true] %s26_s12 }
   0x4   :  { %s156_s15 = scalar_lea.hbm %s295_s0, 128 }
   0x5   :  { %p157_p0 = scmp.ne.s32.totalorder %s295_s0, %s156_s15  ;;  %p160_p1 = scmp.lt.u32.totalorder %s156_s15, %s295_s0 }
   0x7   :  { %p162_p2 = pnand %p160_p1, %p157_p0 }
   0x9   :  { %165 = shalt.err (!%p162_p2)
}
   0xa   :  { %s166_s20 = scalar_lea.vmem %s17_s10, 128  ;;  %p171_p4 = scmp.lt.s32.totalorder %s17_s10, %s17_s10 }
   0xb   :  { %p167_p3 = scmp.ne.s32.totalorder %s17_s10, %s166_s20  ;;  %p172_p5 = scmp.lt.s32.totalorder %s166_s20, %s166_s20 }
   0xd   :  { %p173_p6 = por %p172_p5, %p171_p4 }
   0xf   :  { %p174_p7 = pnand %p173_p6, %p167_p3 }
  0x11   :  { %177 = shalt.err (!%p174_p7)
}
  0x12   :  { %19 = dma.hbm_to_vmem [thread:$0]  %s295_s0, 128, %s17_s10, [#allocation6]  }
  0x13   :  { %s178_s25 = scalar_lea.hbm %s296_s1, 128 }
  0x14   :  { %p179_p8 = scmp.ne.s32.totalorder %s296_s1, %s178_s25  ;;  %p182_p9 = scmp.lt.u32.totalorder %s178_s25, %s296_s1 }
  0x16   :  { %p184_p10 = pnand %p182_p9, %p179_p8 }
  0x18   :  { %187 = shalt.err (!%p184_p10)
}
  0x19   :  { %s188_s30 = scalar_lea.vmem %s27_s12, 128  ;;  %p193_p12 = scmp.lt.s32.totalorder %s27_s12, %s27_s12 }
  0x1a   :  { %p189_p11 = scmp.ne.s32.totalorder %s27_s12, %s188_s30  ;;  %p194_p13 = scmp.lt.s32.totalorder %s188_s30, %s188_s30 }
  0x1c   :  { %p195_p0 = por %p194_p13, %p193_p12 }
  0x1e   :  { %p196_p1 = pnand %p195_p0, %p189_p11 }
  0x20   :  { %199 = shalt.err (!%p196_p1)
}
  0x21   :  { %29 = dma.hbm_to_vmem [thread:$0]  %s296_s1, 128, %s27_s12, [#allocation9]  }
  0x22   :  { %222 = dma.done.wait [#allocation6], 128  }
  0x23   :  { %223 = vsyncadd [#allocation6], 4294967168 }
  0x24   :  { %224 = dma.done.wait [#allocation9], 128  }
  0x25   :  { %225 = vsyncadd [#allocation9], 4294967168  ;;  %vm42_vm0 = vcmask 7168   ;;  %v230_v0 = vmov -inf   ;;  %vm56_vm1 = vcmask 261120   ;;  %v36_v1 = vld [vmem:[#allocation5] sm:$0xff]  ;;  %v47_v13 = vlaneseq }
  0x26   :  { %43 = vst.msk [vmem:[#allocation2] sm:$0xff] %vm42_vm0, %v230_v0  ;;  %v57_v2 = vsel %vm56_vm1, %v36_v1, -inf  ;;  %v231_v3 = vmov 0   ;;  %v37_v4 = vld [vmem:[#allocation8] sm:$0xff]  ;;  %v232_v5 = vmov 0.0   ;;  %s233_s1 = smov [#allocation10]  }
  0x27   :  { %58 = vmax.xlane.f32.xlu0 %v57_v2  ;;  %147 = vset.pattern.permute.xlu1 %v231_v3  ;;  %44 = vst.msk [vmem:[#allocation3] sm:$0xff] %vm42_vm0, %v232_v5  ;;  %45 = vst.msk [vmem:[#allocation4] sm:$0xff] %vm42_vm0, %v232_v5  ;;  %v48_v14 = vand.u32 127, %v47_v13  ;;  %s128_s4 = sshll.u32 %s233_s1, 4  ;;  %s129_s4 = int_to_ptr.vmem [resolvable:$true] %s128_s4 }
  0x28   :  { %146 = vset.pattern.permute.xlu0 %v231_v3  ;;  %52 = vperm.xlu1 %147, %v37_v4   ;;  %s200_s6 = scalar_lea.vmem %s129_s4, 16  ;;  %s204_s7 = scalar_lea.vmem %s129_s4, 32 }
  0x29   :  { %p201_p2 = scmp.ne.s32.totalorder %s129_s4, %s200_s6  ;;  %p205_p3 = scmp.lt.s32.totalorder %s129_s4, %s129_s4 }
  0x2a   :  { %p206_p4 = scmp.lt.s32.totalorder %s204_s7, %s200_s6 }
  0x2c   :  { %p207_p5 = por %p206_p4, %p205_p3 }
  0x2d   :  { %v55_v6 = vld [vmem:[#allocation2] sm:$0xff] }
  0x2e   :  { %v76_v22 = vld [vmem:[#allocation3] sm:$0xff]  ;;  %v85_v26 = vld [vmem:[#allocation4] sm:$0xff]  ;;  %p208_p6 = pnand %p207_p5, %p201_p2 }
  0xa7   :  { %v53_v15 = vpop.permute.xlu1 %52 }
  0xa8   :  { %vm54_vm2 = vcmp.eq.s32.totalorder %v48_v14, %v53_v15 }
  0xa9   :  { %v72_v17 = vsel %vm54_vm2, %v36_v1, 0.0 }
  0xaa   :  { %v73_v19 = vsel %vm56_vm1, %v72_v17, 0.0 }
  0xb4   :  { %v59_v7 = vpop.xlane.xlu0 %58 }
  0xb5   :  { %v60_v8 = vmax.f32 %v55_v6, %v59_v7 }
  0xb7   :  { %v77_v9 = vsub.f32 %v55_v6, %v60_v8  ;;  %84 = vst.msk [vmem:[#allocation2] sm:$0xff] %vm42_vm0, %v60_v8  ;;  %63 = vperm.xlu0 %146, %v60_v8  }
  0xb9   :  { %v78_v20 = vmul.f32 1.442695, %v77_v9 }
  0xbe   :  { %v91_v32 = vld [vmem:[#allocation2] sm:$0xff] }
 0x136   :  { %v64_v10 = vpop.permute.xlu0 %63 }
 0x137   :  { %v66_v11 = vsub.f32 %v36_v1, %v64_v10 }
 0x139   :  { %v67_v12 = vmul.f32 1.442695, %v66_v11 }
 0x13b   :  { %148 = vpow2.f32 %v67_v12 }
 0x13c   :  { %150 = vpow2.f32 %v78_v20 }
 0x145   :  { %v149_v16 = vpop.eup %148 }
 0x146   :  { %v69_v18 = vsel %vm56_vm1, %v149_v16, 0.0  ;;  %v151_v21 = vpop.eup %150 }
 0x147   :  { %70 = vadd.xlane.f32.xlu1 %v69_v18  ;;  %v80_v23 = vmul.f32 %v151_v21, %v76_v22 }
 0x14b   :  { %74 = vadd.xlane.f32.xlu1 %v73_v19 }
 0x1d4   :  { %v71_v24 = vpop.xlane.xlu1 %70 }
 0x1d5   :  { %v81_v25 = vadd.f32 %v80_v23, %v71_v24 }
 0x1d7   :  { %83 = vst.msk [vmem:[#allocation3] sm:$0xff] %vm42_vm0, %v81_v25 }
 0x1d8   :  { %v75_v27 = vpop.xlane.xlu1 %74 }
 0x1d9   :  { %v86_v28 = vadd.f32 %v85_v26, %v75_v27 }
 0x1db   :  { %87 = vst.msk [vmem:[#allocation4] sm:$0xff] %vm42_vm0, %v86_v28 }
 0x1de   :  { %v92_v29 = vld [vmem:[#allocation3] sm:$0xff] }
 0x1df   :  { %152 = vlog2.f32 %v92_v29 }
 0x1e2   :  { %v96_v33 = vld [vmem:[#allocation4] sm:$0xff] }
 0x1e9   :  { %v153_v30 = vpop.eup %152 }
 0x1ea   :  { %v94_v31 = vmul.f32 0.6931472, %v153_v30 }
 0x1ec   :  { %v95_v34 = vadd.f32 %v94_v31, %v91_v32 }
 0x1ee   :  { %v97_v35 = vsub.f32 %v96_v33, %v95_v34 }
 0x1f0   :  { %v98_v36 = vmul.f32 1.442695, %v97_v35 }
 0x1f2   :  { %154 = vpow2.f32 %v98_v36 }
 0x1fc   :  { %v155_v37 = vpop.eup %154 }
 0x1fd   :  { %v100_v38 = vsub.f32 1.0, %v155_v37 }
 0x1ff   :  { %v101_v39 = vmul.f32 %v100_v38, %v100_v38 }
 0x201   :  { %v102_v40 = vmul.f32 %v101_v39, %v97_v35 }
 0x203   :  { %v110_v41 = vsel %vm42_vm0, %v102_v40, 0.0 }
 0x204   :  { %111 = vadd.xlane.f32.xlu1 %v110_v41 }
 0x291   :  { %v112_v42 = vpop.xlane.xlu1 %111 }
 0x292   :  { %v113_v43 = vrot.slane %v112_v42, 4 }
 0x294   :  { %v114_v44 = vadd.f32 %v113_v43, %v112_v42 }
 0x296   :  { %v115_v45 = vrot.slane %v114_v44, 2 }
 0x298   :  { %v116_v46 = vadd.f32 %v115_v45, %v114_v44 }
 0x29a   :  { %v117_v47 = vrot.slane %v116_v46, 1 }
 0x29c   :  { %v118_v48 = vadd.f32 %v117_v47, %v116_v46 }
 0x29e   :  { %138 = vpush %v118_v48 }
 0x2cf   :  { %s139_s5 = spop %138 }
 0x2d0   :  { %v120_v49 = vstv %s139_s5 }
 0x2d1   :  { %121 = vst [vmem:[#allocation10] sm:$0x1] %v120_v49 }
 0x2d2   :  { %211 = shalt.err (!%p208_p6)
}
 0x2d3   :  { %s212_s10 = scalar_lea.hbm %s297_s2, 16 }
 0x2d4   :  { %p213_p7 = scmp.ne.s32.totalorder %s297_s2, %s212_s10  ;;  %p216_p8 = scmp.lt.u32.totalorder %s212_s10, %s297_s2 }
 0x2d6   :  { %p218_p9 = pnand %p216_p8, %p213_p7 }
 0x2d8   :  { %221 = shalt.err (!%p218_p9)
}
 0x2d9   :  { %131 = dma.vmem_to_hbm [thread:$0]  %s129_s4, 16, %s297_s2, [#allocation7]  }
 0x2da   :  { %226 = dma.done.wait [#allocation7], 16  }
 0x2db   :  { %227 = vsyncadd [#allocation7], 4294967280 }
 0x2dc   :  { %135 = vsyncpa [#allocation6], 1 }
 0x2dd   :  { %136 = vsyncpa [#allocation9], 1 }
 0x2de   :  { %137 = vsyncpa [#allocation7], 1 }

</bundles_post_ra>
